<compile_context>
chip_gen: v7x
topology: tpu7x:2x2x1
jax: 0.10.0
libtpu: 0.0.40
codegen_flags: <defaults>
</compile_context>

<pallas_src>
import functools

import jax
import jax.numpy as jnp
from jax.experimental import pallas as pl
from jax.experimental.pallas import tpu as pltpu

# Synthetic stand-in for config/model_config.yaml (deterministic, in-script).
CONFIG = {
    "embedding_module": {"num_embedding": 64, "embedding_dim": 32},
    "lstm_module": {"input_size": 32, "hidden_size": 32, "num_layers": 1, "dropout": 0.0},
    "linear_module": {
        "in_features": 32,
        "hidden_features": [32],
        "out_features": 8,
        "activation": "relu",
        "dropout": 0.25,
    },
}

LANES = 128


# ---------------------------------------------------------------------------
# Fused forward kernel: embedding+proj -> LSTM recurrence -> linear/ReLU -> sum(T)
# ---------------------------------------------------------------------------
def _fused_forward_kernel(ids_ref, pack_ref, out_ref, *, T, B, H, V, G,
                          tab_off, whh_off, bias_off, lin_meta, fold_mean):
    f32 = jnp.float32
    N = T * B

    # --- One-hot gather fused with the input projection (tab_proj = E @ W_ih). ---
    ids = ids_ref[...]                                              # (N, 1) int32, time-major
    vocab_iota = jax.lax.broadcasted_iota(jnp.int32, (N, V), 1)
    one_hot = (ids == vocab_iota).astype(f32)                       # (N, V)

    tab_proj = pack_ref[tab_off:tab_off + V, 0:G]                   # (V, 4H)
    lstm_b = pack_ref[bias_off:bias_off + 1, 0:G]                   # (1, 4H)
    whh = pack_ref[whh_off:whh_off + H, 0:G]                        # (H, 4H)

    # Lane-dense (N, 4H) pre-activations; loop-invariant, lives in ~2 vregs.
    gx = jnp.dot(one_hot, tab_proj, preferred_element_type=f32) + lstm_b

    # --- Recurrence: only h @ W_hh + gate math is on the serial chain. ---
    h = jnp.zeros((B, H), f32)
    c = jnp.zeros((B, H), f32)
    hs = []
    for t in range(T):                                              # static unroll, tiny live set
        gates = gx[t * B:(t + 1) * B, :] + jnp.dot(h, whh, preferred_element_type=f32)
        # Full-width nonlinearities (2 transcendental issues/step), then static
        # H-wide lane slices.  PyTorch gate order: i, f, g, o.
        sig = jax.nn.sigmoid(gates)
        tnh = jnp.tanh(gates)
        i_g = sig[:, 0:H]
        f_g = sig[:, H:2 * H]
        g_g = tnh[:, 2 * H:3 * H]
        o_g = sig[:, 3 * H:4 * H]
        c = f_g * c + i_g * g_g
        h = o_g * jnp.tanh(c)
        hs.append(h)

    x = jnp.concatenate(hs, axis=0)                                 # (N, H), time-major

    # --- Linear + bias + ReLU stack over all T*B rows at once (dropout = identity). ---
    for (w_off, fin, fout, b_off) in lin_meta:
        w = pack_ref[w_off:w_off + fin, 0:fout]                     # (Fin, Fout)
        b = pack_ref[b_off:b_off + 1, 0:fout]                       # (1, Fout)
        x = jnp.maximum(jnp.dot(x, w, preferred_element_type=f32) + b, 0.0)

    # --- Mean over time: 1/T is already folded into the last linear layer, so this
    #     is just a sum of T static sublane slices (no selection matmul, no iota). ---
    F = x.shape[1]
    acc = x[0:B, :]
    for t in range(1, T):
        acc = acc + x[t * B:(t + 1) * B, :]
    if not fold_mean:       # only if there were no linear layers to fold into
        acc = acc * (1.0 / T)
    out_ref[...] = acc.astype(out_ref.dtype)


# ---------------------------------------------------------------------------
# Param-prep: fuse embedding @ W_ih, fold 1/T into last linear layer, and pack
# everything into ONE contiguous (R, 128) f32 buffer + static slice offsets.
# ---------------------------------------------------------------------------
def _roundup(x, m):
    return (x + m - 1) // m * m


def _pad_to(arr, rows, cols):
    r, c = arr.shape
    return jnp.pad(arr, ((0, rows - r), (0, cols - c)))


def pack_params(params, T):
    f32 = jnp.float32
    table = params["embedding"].astype(f32)                 # (V, E)
    w_ih_t = params["w_ih_t"].astype(f32)                   # (E, 4H)
    w_hh_t = params["w_hh_t"].astype(f32)                   # (H, 4H)
    lstm_b = params["lstm_bias"].astype(f32)                # (1, 4H)
    V, _E = table.shape
    H = w_hh_t.shape[0]
    G = 4 * H
    assert G <= LANES, "packed layout assumes the gate width fits one 128-lane tile"

    # Fused embedding gather + input projection (exact by matmul associativity).
    tab_proj = jnp.dot(table, w_ih_t, precision=jax.lax.Precision.HIGHEST)   # (V, 4H)

    pieces = []
    offsets = {}
    off = 0

    def add(name, arr):
        nonlocal off
        rows = _roundup(arr.shape[0], 8)
        pieces.append(_pad_to(arr, rows, LANES))
        offsets[name] = off
        off += rows

    add("tab", tab_proj)
    add("whh", w_hh_t)
    add("bias", lstm_b)

    lin_meta = []
    n_lin = len(params["linear"])
    for li, (w_t, b) in enumerate(params["linear"]):
        scale = (1.0 / T) if li == n_lin - 1 else 1.0        # fold mean's 1/T into last layer
        fin, fout = w_t.shape
        add(f"w{li}", w_t.astype(f32) * scale)
        add(f"b{li}", (b.astype(f32) * scale).reshape(1, fout))
        lin_meta.append((offsets[f"w{li}"], fin, fout, offsets[f"b{li}"]))

    packed = jnp.concatenate(pieces, axis=0)                 # (R, 128) f32

    static = dict(
        H=H, V=V, G=G,
        tab_off=offsets["tab"], whh_off=offsets["whh"], bias_off=offsets["bias"],
        lin_meta=tuple(lin_meta),
        fold_mean=(n_lin >= 1),
    )
    return packed, static


def lstm_model_forward(packed, static, x_bt):
    """x_bt: (B, T) int token ids -> (B, out_features) f32."""
    B, T = x_bt.shape
    H, V, G = static["H"], static["V"], static["G"]
    lin_meta = static["lin_meta"]
    Fout = lin_meta[-1][2] if lin_meta else H

    # Time-major flat ids: row n = t*B + b holds token (b, t).
    ids_tm = x_bt.T.reshape(T * B, 1).astype(jnp.int32)

    kernel = functools.partial(
        _fused_forward_kernel, T=T, B=B, H=H, V=V, G=G,
        tab_off=static["tab_off"], whh_off=static["whh_off"],
        bias_off=static["bias_off"], lin_meta=lin_meta,
        fold_mean=static["fold_mean"])

    # Single grid step, two inbound DMAs (ids + packed weights), everything VMEM
    # resident, only the final (B, Fout) row leaves VMEM.
    return pl.pallas_call(
        kernel,
        out_shape=jax.ShapeDtypeStruct((B, Fout), jnp.float32),
        in_specs=[pl.BlockSpec(memory_space=pltpu.MemorySpace.VMEM)] * 2,
        out_specs=pl.BlockSpec(memory_space=pltpu.MemorySpace.VMEM),
    )(ids_tm, packed)


# ---------------------------------------------------------------------------
# Pure-JAX reference for correctness checking (uses the un-packed params)
# ---------------------------------------------------------------------------
def reference_forward(params, x_bt):
    emb = params["embedding"][x_bt]                               # (B, T, E)
    B, T = x_bt.shape
    H = params["w_hh_t"].shape[0]
    x_tbe = jnp.transpose(emb, (1, 0, 2))

    def step(carry, x_t):
        h, c = carry
        gates = x_t @ params["w_ih_t"] + h @ params["w_hh_t"] + params["lstm_bias"][0]
        i = jax.nn.sigmoid(gates[:, :H])
        f = jax.nn.sigmoid(gates[:, H:2 * H])
        g = jnp.tanh(gates[:, 2 * H:3 * H])
        o = jax.nn.sigmoid(gates[:, 3 * H:])
        c = f * c + i * g
        h = o * jnp.tanh(c)
        return (h, c), h

    init = (jnp.zeros((B, H), jnp.float32), jnp.zeros((B, H), jnp.float32))
    _, hs = jax.lax.scan(step, init, x_tbe)                       # (T, B, H)
    out = hs
    for w_t, b in params["linear"]:
        out = jnp.maximum(out @ w_t + b, 0.0)
    return jnp.mean(out, axis=0)                                  # (B, F)


# ---------------------------------------------------------------------------
# Deterministic parameter init (PyTorch-style uniform ranges)
# ---------------------------------------------------------------------------
def init_params(key):
    cfg = CONFIG
    V = cfg["embedding_module"]["num_embedding"]
    E = cfg["embedding_module"]["embedding_dim"]
    H = cfg["lstm_module"]["hidden_size"]
    feats = ([cfg["linear_module"]["in_features"]]
             + list(cfg["linear_module"]["hidden_features"])
             + [cfg["linear_module"]["out_features"]])

    keys = jax.random.split(key, 6 + 2 * (len(feats) - 1))
    k_emb, k_wih, k_whh, k_bih, k_bhh, _ = keys[:6]
    s = 1.0 / jnp.sqrt(H)

    embedding = jax.random.normal(k_emb, (V, E), jnp.float32)
    w_ih = jax.random.uniform(k_wih, (4 * H, E), jnp.float32, -s, s)
    w_hh = jax.random.uniform(k_whh, (4 * H, H), jnp.float32, -s, s)
    b_ih = jax.random.uniform(k_bih, (4 * H,), jnp.float32, -s, s)
    b_hh = jax.random.uniform(k_bhh, (4 * H,), jnp.float32, -s, s)

    linear = []
    for li in range(len(feats) - 1):
        fin, fout = feats[li], feats[li + 1]
        kw, kb = keys[6 + 2 * li], keys[7 + 2 * li]
        ls = 1.0 / jnp.sqrt(fin)
        w = jax.random.uniform(kw, (fout, fin), jnp.float32, -ls, ls)
        b = jax.random.uniform(kb, (fout,), jnp.float32, -ls, ls)
        linear.append((w.T, b))  # pre-transposed for (N, Fin) @ (Fin, Fout)

    return {
        "embedding": embedding,
        "w_ih_t": w_ih.T,                                   # (E, 4H)
        "w_hh_t": w_hh.T,                                   # (H, 4H)
        "lstm_bias": (b_ih + b_hh).reshape(1, 4 * H),       # (1, 4H)
        "linear": linear,
    }


if __name__ == "__main__":
    key = jax.random.PRNGKey(0)
    k_param, k_data = jax.random.split(key)
    params = init_params(k_param)

    B, T = 2, 8
    V = CONFIG["embedding_module"]["num_embedding"]
    x_bt = jax.random.randint(k_data, (B, T), 0, V, dtype=jnp.int32)

    packed, static = pack_params(params, T)                 # one-time param prep
    out = lstm_model_forward(packed, static, x_bt)
    out = jax.block_until_ready(out)

    ref = jax.block_until_ready(reference_forward(params, x_bt))
    assert out.shape == (B, CONFIG["linear_module"]["out_features"])
    assert jnp.allclose(out, ref, atol=1e-4, rtol=1e-4), "Pallas output mismatch vs reference"

    print("KERNEL_OK")
</pallas_src>

<mosaic_0001>
module attributes {stable_mosaic.version = 11 : i64} {
  func.func @_fused_forward_kernel(%arg0: memref<16x1xi32, #tpu.memory_space<vmem>>, %arg1: memref<184x128xf32, #tpu.memory_space<vmem>>, %arg2: memref<2x8xf32, #tpu.memory_space<vmem>>) attributes {dimension_semantics = [], scalar_prefetch = 0 : i64, scratch_operands = 0 : i64, tpu.core_type = #tpu.core_type<tc>} {
    %c0 = arith.constant 0 : index
    %c0_0 = arith.constant 0 : index
    %0 = vector.load %arg0[%c0, %c0_0] : memref<16x1xi32, #tpu.memory_space<vmem>>, vector<16x1xi32>
    %1 = tpu.iota {dimensions = array<i32: 1>} : vector<16x64xi32>
    %2 = vector.broadcast %0 : vector<16x1xi32> to vector<16x64xi32>
    %3 = arith.cmpi eq, %2, %1 : vector<16x64xi32>
    %4 = arith.extui %3 : vector<16x64xi1> to vector<16x64xi32>
    %5 = arith.sitofp %4 : vector<16x64xi32> to vector<16x64xf32>
    %c0_1 = arith.constant 0 : index
    %c0_2 = arith.constant 0 : index
    %6 = vector.load %arg1[%c0_1, %c0_2] : memref<184x128xf32, #tpu.memory_space<vmem>>, vector<64x128xf32>
    %c96 = arith.constant 96 : index
    %c0_3 = arith.constant 0 : index
    %7 = vector.load %arg1[%c96, %c0_3] : memref<184x128xf32, #tpu.memory_space<vmem>>, vector<1x128xf32>
    %c64 = arith.constant 64 : index
    %c0_4 = arith.constant 0 : index
    %8 = vector.load %arg1[%c64, %c0_4] : memref<184x128xf32, #tpu.memory_space<vmem>>, vector<32x128xf32>
    %cst = arith.constant dense<0.000000e+00> : vector<16x128xf32>
    %9 = tpu.matmul %5, %6, %cst {dimension_numbers = #tpu.dot_dimension_numbers<[1], [0], [0], [1], [0, 0, 1, 1], [], []>} : vector<16x64xf32>, vector<64x128xf32>, vector<16x128xf32> -> vector<16x128xf32>
    %10 = vector.broadcast %7 : vector<1x128xf32> to vector<16x128xf32>
    %11 = arith.addf %9, %10 : vector<16x128xf32>
    %cst_5 = arith.constant 0.000000e+00 : f32
    %12 = vector.broadcast %cst_5 : f32 to vector<2x32xf32>
    %cst_6 = arith.constant 0.000000e+00 : f32
    %13 = vector.broadcast %cst_6 : f32 to vector<2x32xf32>
    %14 = vector.extract_strided_slice %11 {offsets = [0, 0], sizes = [2, 128], strides = [1, 1]} : vector<16x128xf32> to vector<2x128xf32>
    %cst_7 = arith.constant dense<0.000000e+00> : vector<2x128xf32>
    %15 = tpu.matmul %12, %8, %cst_7 {dimension_numbers = #tpu.dot_dimension_numbers<[1], [0], [0], [1], [0, 0, 1, 1], [], []>} : vector<2x32xf32>, vector<32x128xf32>, vector<2x128xf32> -> vector<2x128xf32>
    %16 = arith.addf %14, %15 : vector<2x128xf32>
    %17 = arith.negf %16 : vector<2x128xf32>
    %18 = math.exp %17 : vector<2x128xf32>
    %cst_8 = arith.constant 1.000000e+00 : f32
    %19 = vector.broadcast %cst_8 : f32 to vector<2x128xf32>
    %20 = arith.addf %19, %18 : vector<2x128xf32>
    %21 = arith.divf %19, %20 : vector<2x128xf32>
    %22 = math.tanh %16 : vector<2x128xf32>
    %23 = vector.extract_strided_slice %21 {offsets = [0, 0], sizes = [2, 32], strides = [1, 1]} : vector<2x128xf32> to vector<2x32xf32>
    %24 = vector.extract_strided_slice %21 {offsets = [0, 32], sizes = [2, 32], strides = [1, 1]} : vector<2x128xf32> to vector<2x32xf32>
    %25 = vector.extract_strided_slice %22 {offsets = [0, 64], sizes = [2, 32], strides = [1, 1]} : vector<2x128xf32> to vector<2x32xf32>
    %26 = vector.extract_strided_slice %21 {offsets = [0, 96], sizes = [2, 32], strides = [1, 1]} : vector<2x128xf32> to vector<2x32xf32>
    %27 = arith.mulf %24, %13 : vector<2x32xf32>
    %28 = arith.mulf %23, %25 : vector<2x32xf32>
    %29 = arith.addf %27, %28 : vector<2x32xf32>
    %30 = math.tanh %29 : vector<2x32xf32>
    %31 = arith.mulf %26, %30 : vector<2x32xf32>
    %32 = vector.extract_strided_slice %11 {offsets = [2, 0], sizes = [2, 128], strides = [1, 1]} : vector<16x128xf32> to vector<2x128xf32>
    %cst_9 = arith.constant dense<0.000000e+00> : vector<2x128xf32>
    %33 = tpu.matmul %31, %8, %cst_9 {dimension_numbers = #tpu.dot_dimension_numbers<[1], [0], [0], [1], [0, 0, 1, 1], [], []>} : vector<2x32xf32>, vector<32x128xf32>, vector<2x128xf32> -> vector<2x128xf32>
    %34 = arith.addf %32, %33 : vector<2x128xf32>
    %35 = arith.negf %34 : vector<2x128xf32>
    %36 = math.exp %35 : vector<2x128xf32>
    %cst_10 = arith.constant 1.000000e+00 : f32
    %37 = vector.broadcast %cst_10 : f32 to vector<2x128xf32>
    %38 = arith.addf %37, %36 : vector<2x128xf32>
    %39 = arith.divf %37, %38 : vector<2x128xf32>
    %40 = math.tanh %34 : vector<2x128xf32>
    %41 = vector.extract_strided_slice %39 {offsets = [0, 0], sizes = [2, 32], strides = [1, 1]} : vector<2x128xf32> to vector<2x32xf32>
    %42 = vector.extract_strided_slice %39 {offsets = [0, 32], sizes = [2, 32], strides = [1, 1]} : vector<2x128xf32> to vector<2x32xf32>
    %43 = vector.extract_strided_slice %40 {offsets = [0, 64], sizes = [2, 32], strides = [1, 1]} : vector<2x128xf32> to vector<2x32xf32>
    %44 = vector.extract_strided_slice %39 {offsets = [0, 96], sizes = [2, 32], strides = [1, 1]} : vector<2x128xf32> to vector<2x32xf32>
    %45 = arith.mulf %42, %29 : vector<2x32xf32>
    %46 = arith.mulf %41, %43 : vector<2x32xf32>
    %47 = arith.addf %45, %46 : vector<2x32xf32>
    %48 = math.tanh %47 : vector<2x32xf32>
    %49 = arith.mulf %44, %48 : vector<2x32xf32>
    %50 = vector.extract_strided_slice %11 {offsets = [4, 0], sizes = [2, 128], strides = [1, 1]} : vector<16x128xf32> to vector<2x128xf32>
    %cst_11 = arith.constant dense<0.000000e+00> : vector<2x128xf32>
    %51 = tpu.matmul %49, %8, %cst_11 {dimension_numbers = #tpu.dot_dimension_numbers<[1], [0], [0], [1], [0, 0, 1, 1], [], []>} : vector<2x32xf32>, vector<32x128xf32>, vector<2x128xf32> -> vector<2x128xf32>
    %52 = arith.addf %50, %51 : vector<2x128xf32>
    %53 = arith.negf %52 : vector<2x128xf32>
    %54 = math.exp %53 : vector<2x128xf32>
    %cst_12 = arith.constant 1.000000e+00 : f32
    %55 = vector.broadcast %cst_12 : f32 to vector<2x128xf32>
    %56 = arith.addf %55, %54 : vector<2x128xf32>
    %57 = arith.divf %55, %56 : vector<2x128xf32>
    %58 = math.tanh %52 : vector<2x128xf32>
    %59 = vector.extract_strided_slice %57 {offsets = [0, 0], sizes = [2, 32], strides = [1, 1]} : vector<2x128xf32> to vector<2x32xf32>
    %60 = vector.extract_strided_slice %57 {offsets = [0, 32], sizes = [2, 32], strides = [1, 1]} : vector<2x128xf32> to vector<2x32xf32>
    %61 = vector.extract_strided_slice %58 {offsets = [0, 64], sizes = [2, 32], strides = [1, 1]} : vector<2x128xf32> to vector<2x32xf32>
    %62 = vector.extract_strided_slice %57 {offsets = [0, 96], sizes = [2, 32], strides = [1, 1]} : vector<2x128xf32> to vector<2x32xf32>
    %63 = arith.mulf %60, %47 : vector<2x32xf32>
    %64 = arith.mulf %59, %61 : vector<2x32xf32>
    %65 = arith.addf %63, %64 : vector<2x32xf32>
    %66 = math.tanh %65 : vector<2x32xf32>
    %67 = arith.mulf %62, %66 : vector<2x32xf32>
    %68 = vector.extract_strided_slice %11 {offsets = [6, 0], sizes = [2, 128], strides = [1, 1]} : vector<16x128xf32> to vector<2x128xf32>
    %cst_13 = arith.constant dense<0.000000e+00> : vector<2x128xf32>
    %69 = tpu.matmul %67, %8, %cst_13 {dimension_numbers = #tpu.dot_dimension_numbers<[1], [0], [0], [1], [0, 0, 1, 1], [], []>} : vector<2x32xf32>, vector<32x128xf32>, vector<2x128xf32> -> vector<2x128xf32>
    %70 = arith.addf %68, %69 : vector<2x128xf32>
    %71 = arith.negf %70 : vector<2x128xf32>
    %72 = math.exp %71 : vector<2x128xf32>
    %cst_14 = arith.constant 1.000000e+00 : f32
    %73 = vector.broadcast %cst_14 : f32 to vector<2x128xf32>
    %74 = arith.addf %73, %72 : vector<2x128xf32>
    %75 = arith.divf %73, %74 : vector<2x128xf32>
    %76 = math.tanh %70 : vector<2x128xf32>
    %77 = vector.extract_strided_slice %75 {offsets = [0, 0], sizes = [2, 32], strides = [1, 1]} : vector<2x128xf32> to vector<2x32xf32>
    %78 = vector.extract_strided_slice %75 {offsets = [0, 32], sizes = [2, 32], strides = [1, 1]} : vector<2x128xf32> to vector<2x32xf32>
    %79 = vector.extract_strided_slice %76 {offsets = [0, 64], sizes = [2, 32], strides = [1, 1]} : vector<2x128xf32> to vector<2x32xf32>
    %80 = vector.extract_strided_slice %75 {offsets = [0, 96], sizes = [2, 32], strides = [1, 1]} : vector<2x128xf32> to vector<2x32xf32>
    %81 = arith.mulf %78, %65 : vector<2x32xf32>
    %82 = arith.mulf %77, %79 : vector<2x32xf32>
    %83 = arith.addf %81, %82 : vector<2x32xf32>
    %84 = math.tanh %83 : vector<2x32xf32>
    %85 = arith.mulf %80, %84 : vector<2x32xf32>
    %86 = vector.extract_strided_slice %11 {offsets = [8, 0], sizes = [2, 128], strides = [1, 1]} : vector<16x128xf32> to vector<2x128xf32>
    %cst_15 = arith.constant dense<0.000000e+00> : vector<2x128xf32>
    %87 = tpu.matmul %85, %8, %cst_15 {dimension_numbers = #tpu.dot_dimension_numbers<[1], [0], [0], [1], [0, 0, 1, 1], [], []>} : vector<2x32xf32>, vector<32x128xf32>, vector<2x128xf32> -> vector<2x128xf32>
    %88 = arith.addf %86, %87 : vector<2x128xf32>
    %89 = arith.negf %88 : vector<2x128xf32>
    %90 = math.exp %89 : vector<2x128xf32>
    %cst_16 = arith.constant 1.000000e+00 : f32
    %91 = vector.broadcast %cst_16 : f32 to vector<2x128xf32>
    %92 = arith.addf %91, %90 : vector<2x128xf32>
    %93 = arith.divf %91, %92 : vector<2x128xf32>
    %94 = math.tanh %88 : vector<2x128xf32>
    %95 = vector.extract_strided_slice %93 {offsets = [0, 0], sizes = [2, 32], strides = [1, 1]} : vector<2x128xf32> to vector<2x32xf32>
    %96 = vector.extract_strided_slice %93 {offsets = [0, 32], sizes = [2, 32], strides = [1, 1]} : vector<2x128xf32> to vector<2x32xf32>
    %97 = vector.extract_strided_slice %94 {offsets = [0, 64], sizes = [2, 32], strides = [1, 1]} : vector<2x128xf32> to vector<2x32xf32>
    %98 = vector.extract_strided_slice %93 {offsets = [0, 96], sizes = [2, 32], strides = [1, 1]} : vector<2x128xf32> to vector<2x32xf32>
    %99 = arith.mulf %96, %83 : vector<2x32xf32>
    %100 = arith.mulf %95, %97 : vector<2x32xf32>
    %101 = arith.addf %99, %100 : vector<2x32xf32>
    %102 = math.tanh %101 : vector<2x32xf32>
    %103 = arith.mulf %98, %102 : vector<2x32xf32>
    %104 = vector.extract_strided_slice %11 {offsets = [10, 0], sizes = [2, 128], strides = [1, 1]} : vector<16x128xf32> to vector<2x128xf32>
    %cst_17 = arith.constant dense<0.000000e+00> : vector<2x128xf32>
    %105 = tpu.matmul %103, %8, %cst_17 {dimension_numbers = #tpu.dot_dimension_numbers<[1], [0], [0], [1], [0, 0, 1, 1], [], []>} : vector<2x32xf32>, vector<32x128xf32>, vector<2x128xf32> -> vector<2x128xf32>
    %106 = arith.addf %104, %105 : vector<2x128xf32>
    %107 = arith.negf %106 : vector<2x128xf32>
    %108 = math.exp %107 : vector<2x128xf32>
    %cst_18 = arith.constant 1.000000e+00 : f32
    %109 = vector.broadcast %cst_18 : f32 to vector<2x128xf32>
    %110 = arith.addf %109, %108 : vector<2x128xf32>
    %111 = arith.divf %109, %110 : vector<2x128xf32>
    %112 = math.tanh %106 : vector<2x128xf32>
    %113 = vector.extract_strided_slice %111 {offsets = [0, 0], sizes = [2, 32], strides = [1, 1]} : vector<2x128xf32> to vector<2x32xf32>
    %114 = vector.extract_strided_slice %111 {offsets = [0, 32], sizes = [2, 32], strides = [1, 1]} : vector<2x128xf32> to vector<2x32xf32>
    %115 = vector.extract_strided_slice %112 {offsets = [0, 64], sizes = [2, 32], strides = [1, 1]} : vector<2x128xf32> to vector<2x32xf32>
    %116 = vector.extract_strided_slice %111 {offsets = [0, 96], sizes = [2, 32], strides = [1, 1]} : vector<2x128xf32> to vector<2x32xf32>
    %117 = arith.mulf %114, %101 : vector<2x32xf32>
    %118 = arith.mulf %113, %115 : vector<2x32xf32>
    %119 = arith.addf %117, %118 : vector<2x32xf32>
    %120 = math.tanh %119 : vector<2x32xf32>
    %121 = arith.mulf %116, %120 : vector<2x32xf32>
    %122 = vector.extract_strided_slice %11 {offsets = [12, 0], sizes = [2, 128], strides = [1, 1]} : vector<16x128xf32> to vector<2x128xf32>
    %cst_19 = arith.constant dense<0.000000e+00> : vector<2x128xf32>
    %123 = tpu.matmul %121, %8, %cst_19 {dimension_numbers = #tpu.dot_dimension_numbers<[1], [0], [0], [1], [0, 0, 1, 1], [], []>} : vector<2x32xf32>, vector<32x128xf32>, vector<2x128xf32> -> vector<2x128xf32>
    %124 = arith.addf %122, %123 : vector<2x128xf32>
    %125 = arith.negf %124 : vector<2x128xf32>
    %126 = math.exp %125 : vector<2x128xf32>
    %cst_20 = arith.constant 1.000000e+00 : f32
    %127 = vector.broadcast %cst_20 : f32 to vector<2x128xf32>
    %128 = arith.addf %127, %126 : vector<2x128xf32>
    %129 = arith.divf %127, %128 : vector<2x128xf32>
    %130 = math.tanh %124 : vector<2x128xf32>
    %131 = vector.extract_strided_slice %129 {offsets = [0, 0], sizes = [2, 32], strides = [1, 1]} : vector<2x128xf32> to vector<2x32xf32>
    %132 = vector.extract_strided_slice %129 {offsets = [0, 32], sizes = [2, 32], strides = [1, 1]} : vector<2x128xf32> to vector<2x32xf32>
    %133 = vector.extract_strided_slice %130 {offsets = [0, 64], sizes = [2, 32], strides = [1, 1]} : vector<2x128xf32> to vector<2x32xf32>
    %134 = vector.extract_strided_slice %129 {offsets = [0, 96], sizes = [2, 32], strides = [1, 1]} : vector<2x128xf32> to vector<2x32xf32>
    %135 = arith.mulf %132, %119 : vector<2x32xf32>
    %136 = arith.mulf %131, %133 : vector<2x32xf32>
    %137 = arith.addf %135, %136 : vector<2x32xf32>
    %138 = math.tanh %137 : vector<2x32xf32>
    %139 = arith.mulf %134, %138 : vector<2x32xf32>
    %140 = vector.extract_strided_slice %11 {offsets = [14, 0], sizes = [2, 128], strides = [1, 1]} : vector<16x128xf32> to vector<2x128xf32>
    %cst_21 = arith.constant dense<0.000000e+00> : vector<2x128xf32>
    %141 = tpu.matmul %139, %8, %cst_21 {dimension_numbers = #tpu.dot_dimension_numbers<[1], [0], [0], [1], [0, 0, 1, 1], [], []>} : vector<2x32xf32>, vector<32x128xf32>, vector<2x128xf32> -> vector<2x128xf32>
    %142 = arith.addf %140, %141 : vector<2x128xf32>
    %143 = arith.negf %142 : vector<2x128xf32>
    %144 = math.exp %143 : vector<2x128xf32>
    %cst_22 = arith.constant 1.000000e+00 : f32
    %145 = vector.broadcast %cst_22 : f32 to vector<2x128xf32>
    %146 = arith.addf %145, %144 : vector<2x128xf32>
    %147 = arith.divf %145, %146 : vector<2x128xf32>
    %148 = math.tanh %142 : vector<2x128xf32>
    %149 = vector.extract_strided_slice %147 {offsets = [0, 0], sizes = [2, 32], strides = [1, 1]} : vector<2x128xf32> to vector<2x32xf32>
    %150 = vector.extract_strided_slice %147 {offsets = [0, 32], sizes = [2, 32], strides = [1, 1]} : vector<2x128xf32> to vector<2x32xf32>
    %151 = vector.extract_strided_slice %148 {offsets = [0, 64], sizes = [2, 32], strides = [1, 1]} : vector<2x128xf32> to vector<2x32xf32>
    %152 = vector.extract_strided_slice %147 {offsets = [0, 96], sizes = [2, 32], strides = [1, 1]} : vector<2x128xf32> to vector<2x32xf32>
    %153 = arith.mulf %150, %137 : vector<2x32xf32>
    %154 = arith.mulf %149, %151 : vector<2x32xf32>
    %155 = arith.addf %153, %154 : vector<2x32xf32>
    %156 = math.tanh %155 : vector<2x32xf32>
    %157 = arith.mulf %152, %156 : vector<2x32xf32>
    %158 = tpu.concatenate %31, %49, %67, %85, %103, %121, %139, %157 in 0 : vector<2x32xf32>, vector<2x32xf32>, vector<2x32xf32>, vector<2x32xf32>, vector<2x32xf32>, vector<2x32xf32>, vector<2x32xf32>, vector<2x32xf32> -> vector<16x32xf32>
    %c104 = arith.constant 104 : index
    %c0_23 = arith.constant 0 : index
    %159 = vector.load %arg1[%c104, %c0_23] : memref<184x128xf32, #tpu.memory_space<vmem>>, vector<32x32xf32>
    %c136 = arith.constant 136 : index
    %c0_24 = arith.constant 0 : index
    %160 = vector.load %arg1[%c136, %c0_24] : memref<184x128xf32, #tpu.memory_space<vmem>>, vector<1x32xf32>
    %cst_25 = arith.constant dense<0.000000e+00> : vector<16x32xf32>
    %161 = tpu.matmul %158, %159, %cst_25 {dimension_numbers = #tpu.dot_dimension_numbers<[1], [0], [0], [1], [0, 0, 1, 1], [], []>} : vector<16x32xf32>, vector<32x32xf32>, vector<16x32xf32> -> vector<16x32xf32>
    %162 = vector.broadcast %160 : vector<1x32xf32> to vector<16x32xf32>
    %163 = arith.addf %161, %162 : vector<16x32xf32>
    %cst_26 = arith.constant 0.000000e+00 : f32
    %164 = vector.broadcast %cst_26 : f32 to vector<16x32xf32>
    %165 = arith.maximumf %163, %164 : vector<16x32xf32>
    %c144 = arith.constant 144 : index
    %c0_27 = arith.constant 0 : index
    %166 = vector.load %arg1[%c144, %c0_27] : memref<184x128xf32, #tpu.memory_space<vmem>>, vector<32x8xf32>
    %c176 = arith.constant 176 : index
    %c0_28 = arith.constant 0 : index
    %167 = vector.load %arg1[%c176, %c0_28] : memref<184x128xf32, #tpu.memory_space<vmem>>, vector<1x8xf32>
    %cst_29 = arith.constant dense<0.000000e+00> : vector<16x8xf32>
    %168 = tpu.matmul %165, %166, %cst_29 {dimension_numbers = #tpu.dot_dimension_numbers<[1], [0], [0], [1], [0, 0, 1, 1], [], []>} : vector<16x32xf32>, vector<32x8xf32>, vector<16x8xf32> -> vector<16x8xf32>
    %169 = vector.broadcast %167 : vector<1x8xf32> to vector<16x8xf32>
    %170 = arith.addf %168, %169 : vector<16x8xf32>
    %cst_30 = arith.constant 0.000000e+00 : f32
    %171 = vector.broadcast %cst_30 : f32 to vector<16x8xf32>
    %172 = arith.maximumf %170, %171 : vector<16x8xf32>
    %173 = vector.extract_strided_slice %172 {offsets = [0, 0], sizes = [2, 8], strides = [1, 1]} : vector<16x8xf32> to vector<2x8xf32>
    %174 = vector.extract_strided_slice %172 {offsets = [2, 0], sizes = [2, 8], strides = [1, 1]} : vector<16x8xf32> to vector<2x8xf32>
    %175 = arith.addf %173, %174 : vector<2x8xf32>
    %176 = vector.extract_strided_slice %172 {offsets = [4, 0], sizes = [2, 8], strides = [1, 1]} : vector<16x8xf32> to vector<2x8xf32>
    %177 = arith.addf %175, %176 : vector<2x8xf32>
    %178 = vector.extract_strided_slice %172 {offsets = [6, 0], sizes = [2, 8], strides = [1, 1]} : vector<16x8xf32> to vector<2x8xf32>
    %179 = arith.addf %177, %178 : vector<2x8xf32>
    %180 = vector.extract_strided_slice %172 {offsets = [8, 0], sizes = [2, 8], strides = [1, 1]} : vector<16x8xf32> to vector<2x8xf32>
    %181 = arith.addf %179, %180 : vector<2x8xf32>
    %182 = vector.extract_strided_slice %172 {offsets = [10, 0], sizes = [2, 8], strides = [1, 1]} : vector<16x8xf32> to vector<2x8xf32>
    %183 = arith.addf %181, %182 : vector<2x8xf32>
    %184 = vector.extract_strided_slice %172 {offsets = [12, 0], sizes = [2, 8], strides = [1, 1]} : vector<16x8xf32> to vector<2x8xf32>
    %185 = arith.addf %183, %184 : vector<2x8xf32>
    %186 = vector.extract_strided_slice %172 {offsets = [14, 0], sizes = [2, 8], strides = [1, 1]} : vector<16x8xf32> to vector<2x8xf32>
    %187 = arith.addf %185, %186 : vector<2x8xf32>
    %c0_31 = arith.constant 0 : index
    %c0_32 = arith.constant 0 : index
    %188 = vector.load %arg2[%c0_31, %c0_32] : memref<2x8xf32, #tpu.memory_space<vmem>>, vector<2x8xf32>
    tpu.vector_store %arg2[%c0_31, %c0_32], %187 {strides = array<i32>} : memref<2x8xf32, #tpu.memory_space<vmem>>, vector<2x8xf32>,
    return
  }
}

</mosaic_0001>

<bundles_post_ra>
// kernel: tpu_custom_call.1
= control target key start
LH: loop header
LB: loop body
LE: loop exit
PB: predicated region body
PF: predicated region fallthrough
CT: control target
= control target key end

     0   :  { %7 = vsyncpa [#allocation3], 0  ;;  %s1822_s0 = inlined_call_operand.vmem [shape: s32[16,1], index: 0, kind: input, shape index: {}]   ;;  %s1823_s1 = inlined_call_operand.hbm [shape: f32[184,128], index: 1, kind: input, shape index: {}]   ;;  %s1824_s2 = inlined_call_operand.hbm [shape: f32[2,8], index: 2, kind: output, shape index: {}]  }
   0x1   :  { %8 = vsyncpa [#allocation4], 0  ;;  %s1639_s9 = smov [#allocation2]   ;;  %s1591_s13 = scalar_lea.hbm %s1823_s1, 2944 }
   0x2   :  { %s16_s10 = sshll.u32 %s1639_s9, 4  ;;  %p1592_p0 = scmp.ne.s32.totalorder %s1823_s1, %s1591_s13  ;;  %s17_s10 = int_to_ptr.vmem [resolvable:$true] %s16_s10 }
   0x3   :  { %p1595_p1 = scmp.lt.u32.totalorder %s1591_s13, %s1823_s1 }
   0x5   :  { %p1597_p2 = pnand %p1595_p1, %p1592_p0 }
   0x7   :  { %1600 = shalt.err (!%p1597_p2)
}
   0x8   :  { %s1601_s18 = scalar_lea.vmem %s17_s10, 2944  ;;  %p1606_p4 = scmp.lt.s32.totalorder %s17_s10, %s17_s10 }
   0x9   :  { %p1602_p3 = scmp.ne.s32.totalorder %s17_s10, %s1601_s18  ;;  %p1607_p5 = scmp.lt.s32.totalorder %s1601_s18, %s1601_s18 }
   0xb   :  { %p1608_p6 = por %p1607_p5, %p1606_p4 }
   0xd   :  { %p1609_p7 = pnand %p1608_p6, %p1602_p3 }
   0xf   :  { %1612 = shalt.err (!%p1609_p7)
}
  0x10   :  { %s1640_s19 = smov 128   ;;  %s1641_s20 = smov 8  }
  0x11   :  { %22 = dma.hbm_to_vmem [thread:$0]  %s1823_s1, 2944, %s17_s10, [#allocation3], %s1640_s19, %s1640_s19, %s1641_s20  }
  0x12   :  { %1635 = dma.done.wait [#allocation3], 2944  }
  0x13   :  { %1636 = vsyncadd [#allocation3], 4294964352  ;;  %v1642_v0 = vmov 0   ;;  %v26_v1 = vld [vmem:[%s1822_s0] sm:$0xff]  ;;  %v43_v3 = vld [vmem:[#allocation2 + $0x8] sm:$0xff]  ;;  %v1643_v6 = vmov 0.0|0.0   ;;  %v28_v23 = vlaneseq }
  0x14   :  { %1526 = vset.pattern.permute.xlu0 %v1642_v0  ;;  %v42_v2 = vld [vmem:[#allocation2] sm:$0xff]  ;;  %v44_v4 = vld [vmem:[#allocation2 + $0x10] sm:$0xff]  ;;  %v45_v5 = vld [vmem:[#allocation2 + $0x18] sm:$0xff]  ;;  %1452 = vmatprep.subr.bf16.mxu1 %v1643_v6  ;;  %vm1644_vm0 = vmmov 0   ;;  %v1645_v21 = vmov 0.0   ;;  %vm59_vm1 = vcmask 523264  }
  0x15   :  { %31 = vperm.xlu0 %1526, %v26_v1   ;;  %v27_v7 = vld [vmem:[%s1822_s0 + $0x8] sm:$0xff]  ;;  %v1436_v8 = vpack.c.bf16 %v43_v3, %v42_v2  ;;  %v1440_v9 = vpack.c.bf16 %v45_v5, %v44_v4  ;;  %v51_v10 = vld [vmem:[#allocation2 + $0x40] sm:$0xff]  ;;  %v53_v15 = vld [vmem:[#allocation2 + $0x50] sm:$0xff]  ;;  %1334 = vmatprep.mubr.msk.f32.mxu1 %vm1644_vm0, %v1645_v21  ;;  %v29_v24 = vand.u32 127, %v28_v23  ;;  %s1646_s0 = smov 64   ;;  %s1647_s1 = smov 32  }
  0x16   :  { %v46_v11 = vld [vmem:[#allocation2 + $0x20] sm:$0xff]  ;;  %v47_v12 = vld [vmem:[#allocation2 + $0x28] sm:$0xff]  ;;  %v54_v16 = vld [vmem:[#allocation2 + $0x58] sm:$0xff]  ;;  %vm141_vm4 = vcmask 261120   ;;  %vm984_vm5 = vcmask 1041408   ;;  %vm986_vm6 = vcmask 1043456  }
  0x17   :  { %v52_v13 = vld [vmem:[#allocation2 + $0x48] sm:$0xff]  ;;  %1437 = vmatprep.subr.bf16.mxu0 %v1436_v8  ;;  %v1444_v17 = vpack.c.bf16 %v47_v12, %v46_v11  ;;  %v1686_v18 = vpack.c.bf16 %v54_v16, %v53_v15  ;;  %v48_v19 = vld [vmem:[#allocation2 + $0x30] sm:$0xff]  ;;  %v49_v20 = vld [vmem:[#allocation2 + $0x38] sm:$0xff]  ;;  %vm988_vm7 = vcmask 1045504   ;;  %s1648_s27 = smov [#allocation5]   ;;  %vm1202_vm8 = vcmask 58368  }
  0x18   :  { %v1683_v14 = vpack.c.bf16 %v52_v13, %v51_v10  ;;  %1439 = vmatpush3.bf16.msra.mxu0 %v1436_v8  ;;  %v1448_v22 = vpack.c.bf16 %v49_v20, %v48_v19  ;;  %v1221_v31 = vld [vmem:[#allocation2 + $0x60] ss:$0 sm:$0xff]  ;;  %s1210_s28 = sshll.u32 %s1648_s27, 4  ;;  %s1211_s28 = int_to_ptr.vmem [resolvable:$true] %s1210_s28 }
  0x19   :  { %34 = vperm.xlu0 %1526, %v27_v7   ;;  %1441 = vmatprep.subr.bf16.mxu0 %v1440_v9  ;;  %s1613_s29 = scalar_lea.vmem %s1211_s28, 32  ;;  %p1618_p9 = scmp.lt.s32.totalorder %s1211_s28, %s1211_s28 }
  0x1a   :  { %1454 = vmatpush3.bf16.msra.mxu1 %v1683_v14  ;;  %p1614_p8 = scmp.ne.s32.totalorder %s1211_s28, %s1613_s29  ;;  %p1619_p10 = scmp.lt.s32.totalorder %s1613_s29, %s1613_s29 }
  0x1b   :  { %1455 = vmatprep.subr.bf16.mxu1 %v1643_v6 }
  0x1c   :  { %1443 = vmatpush3.bf16.msra.mxu0 %v1440_v9  ;;  %p1620_p11 = por %p1619_p10, %p1618_p9 }
  0x1d   :  { %1445 = vmatprep.subr.bf16.mxu0 %v1444_v17 }
  0x1e   :  { %1457 = vmatpush3.bf16.msra.mxu1 %v1686_v18  ;;  %p1621_p12 = pnand %p1620_p11, %p1614_p8 }
  0x1f   :  { %1458 = vmatprep.subr.bf16.mxu1 %v1643_v6 }
  0x20   :  { %1447 = vmatpush3.bf16.msra.mxu0 %v1444_v17 }
  0x21   :  { %1335 = vmatmul.mubr.f32.vlgmr.msra.gmra.mrb[0].mxu1 %v1645_v21  ;;  %1449 = vmatprep.subr.bf16.mxu0 %v1448_v22 }
  0x22   :  { %1460 = vmatpush3.bf16.msra.mxu1 %v1683_v14  ;;  %1345 = vmatprep.mubr.msk.f32.mxu1 %vm1644_vm0, %v1645_v21 }
  0x23   :  { %1461 = vmatprep.subr.bf16.mxu1 %v1643_v6 }
  0x24   :  { %1451 = vmatpush3.bf16.msra.mxu0 %v1448_v22 }
  0x25   :  { %1464 = vmatprep.subr.bf16.mxu0 %v1643_v6 }
  0x26   :  { %1463 = vmatpush3.bf16.msra.mxu1 %v1686_v18 }
  0x27   :  { %1470 = vmatprep.subr.bf16.mxu1 %v1643_v6 }
  0x94   :  { %v32_v25 = vpop.permute.xlu0 %31 }
  0x95   :  { %vm36_vm2 = vcmp.eq.s32.totalorder %v32_v25, %v29_v24 }
  0x96   :  { %v1219_v26 = vsel %vm36_vm2, 1.0, %v1645_v21 }
  0x97   :  { %1323 = vmatprep.mubr.msk.f32.mxu0 %vm59_vm1, %v1219_v26 }
  0x98   :  { %v35_v27 = vpop.permute.xlu0 %34 }
  0x99   :  { %vm37_vm3 = vcmp.eq.s32.totalorder %v35_v27, %v29_v24 }
  0x9a   :  { %v1220_v28 = vsel %vm37_vm3, 1.0, %v1645_v21 }
  0x9b   :  { %1324 = vmatmul.mubr.msk.f32.vlgmr.msra.gmra.mrb[0].mxu0 %vm59_vm1, %v1220_v28 }
  0x9c   :  { %1466 = vmatpush3.bf16.msra.mxu0 %v1683_v14  ;;  %1356 = vmatprep.mubr.msk.f32.mxu0 %vm1644_vm0, %v1645_v21 }
  0x9d   :  { %1467 = vmatprep.subr.bf16.mxu0 %v1643_v6 }
  0xa0   :  { %1469 = vmatpush3.bf16.msra.mxu0 %v1686_v18 }
  0xa1   :  { %1476 = vmatprep.subr.bf16.mxu0 %v1643_v6 }
  0xf4   :  { %v211_v29 = vpop.f32.mrb[0].mxu1 }
  0xf5   :  { %v1336_v30 = vpop.f32.mrb[1].mxu1 }
 0x16e   :  { %v1325_v32 = vpop.f32.mrb[0].mxu0 }
 0x16f   :  { %v1709_v33 = vadd.f32 %v1325_v32, %v1221_v31  ;;  %v132_v34 = vpop.f32.mrb[1].mxu0 }
 0x170   :  { %v1711_v35 = vadd.f32 %v1221_v31, %v132_v34 }
 0x172   :  { %v215_v36 = vadd.f32 %v211_v29, %v1711_v35 }
 0x174   :  { %1527 = vtanh.f32 %v215_v36  ;;  %v1224_v38 = vmul.f32 -1.442695, %v215_v36 }
 0x176   :  { %1529 = vpow2.f32 %v1224_v38 }
 0x17e   :  { %v1528_v37 = vpop.eup %1527 }
 0x17f   :  { %225 = vrot.lane.b32.xlu1 %v1528_v37, %s1646_s0 }
 0x180   :  { %v1530_v39 = vpop.eup %1529 }
 0x181   :  { %v219_v40 = vadd.f32 1.0, %v1530_v39 }
 0x183   :  { %1531 = vrcp.f32 %v219_v40 }
 0x18d   :  { %v1532_v41 = vpop.eup %1531 }
 0x18e   :  { %v223_v44 = vmul.f32 0.0, %v1532_v41 }
 0x1f1   :  { %v226_v42 = vpop.permute.xlu1 %225 }
 0x1f2   :  { %v228_v43 = vmul.f32 %v1532_v41, %v226_v42 }
 0x1f4   :  { %230 = vrot.lane.b32.xlu1 %v228_v43, %s1647_s1 }
 0x266   :  { %v231_v45 = vpop.permute.xlu1 %230 }
 0x267   :  { %v233_v46 = vadd.f32 %v231_v45, %v223_v44 }
 0x269   :  { %1533 = vtanh.f32 %v233_v46  ;;  %v327_v62 = vrot.slane %v233_v46, 6 }
 0x273   :  { %v1534_v47 = vpop.eup %1533 }
 0x274   :  { %236 = vrot.lane.b32.xlu0 %v1534_v47, %s1646_s0 }
 0x2e6   :  { %v237_v48 = vpop.permute.xlu0 %236 }
 0x2e7   :  { %v1717_v49 = vmul.f32 %v1532_v41, %v237_v48 }
 0x2e9   :  { %241 = vrot.lane.b32.xlu1 %v1717_v49, %s1647_s1 }
 0x35b   :  { %v242_v50 = vpop.permute.xlu1 %241 }
 0x35c   :  { %1346 = vmatmul.mubr.msk.f32.vlgmr.msra.gmra.mrb[2].mxu1 %vm141_vm4, %v242_v50 }
 0x35d   :  { %1472 = vmatpush3.bf16.msra.mxu1 %v1683_v14  ;;  %1367 = vmatprep.mubr.msk.f32.mxu1 %vm1644_vm0, %v1645_v21 }
 0x35e   :  { %1473 = vmatprep.subr.bf16.mxu1 %v1643_v6 }
 0x361   :  { %1475 = vmatpush3.bf16.msra.mxu1 %v1686_v18 }
 0x362   :  { %1482 = vmatprep.subr.bf16.mxu1 %v1643_v6 }
 0x42f   :  { %v311_v51 = vpop.f32.mrb[2].mxu1 }
 0x430   :  { %v316_v52 = vrot.slane %v311_v51, 6  ;;  %v1347_v53 = vpop.f32.mrb[3].mxu1 }
 0x432   :  { %v318_v54 = vadd.f32 %v316_v52, %v1711_v35 }
 0x434   :  { %1535 = vtanh.f32 %v318_v54  ;;  %v1226_v56 = vmul.f32 -1.442695, %v318_v54 }
 0x436   :  { %1537 = vpow2.f32 %v1226_v56 }
 0x43e   :  { %v1536_v55 = vpop.eup %1535 }
 0x43f   :  { %331 = vrot.lane.b32.xlu0 %v1536_v55, %s1646_s0 }
 0x440   :  { %v1538_v57 = vpop.eup %1537 }
 0x441   :  { %v322_v58 = vadd.f32 1.0, %v1538_v57 }
 0x443   :  { %1539 = vrcp.f32 %v322_v58 }
 0x44d   :  { %v1540_v59 = vpop.eup %1539 }
 0x44e   :  { %v329_v63 = vmul.f32 %v1540_v59, %v327_v62 }
 0x4b1   :  { %v332_v60 = vpop.permute.xlu0 %331 }
 0x4b2   :  { %v334_v61 = vmul.f32 %v1540_v59, %v332_v60 }
 0x4b4   :  { %336 = vrot.lane.b32.xlu1 %v334_v61, %s1647_s1 }
 0x526   :  { %v337_v0 = vpop.permute.xlu1 %336 }
 0x527   :  { %v339_v1 = vadd.f32 %v337_v0, %v329_v63 }
 0x529   :  { %1541 = vtanh.f32 %v339_v1  ;;  %v434_v22 = vrot.slane %v339_v1, 6 }
 0x533   :  { %v1542_v2 = vpop.eup %1541 }
 0x534   :  { %342 = vrot.lane.b32.xlu0 %v1542_v2, %s1646_s0 }
 0x5a6   :  { %v343_v3 = vpop.permute.xlu0 %342 }
 0x5a7   :  { %v345_v4 = vmul.f32 %v1540_v59, %v343_v3 }
 0x5a9   :  { %v347_v5 = vrot.slane %v345_v4, 2  ;;  %v985_v29 = vsel %vm984_vm5, %v1717_v49, %v345_v4 }
 0x5ab   :  { %348 = vrot.lane.b32.xlu1 %v347_v5, %s1647_s1 }
 0x61d   :  { %v349_v7 = vpop.permute.xlu1 %348 }
 0x61e   :  { %1357 = vmatmul.mubr.msk.f32.vlgmr.msra.gmra.mrb[2].mxu0 %vm141_vm4, %v349_v7 }
 0x61f   :  { %1478 = vmatpush3.bf16.msra.mxu0 %v1683_v14  ;;  %1378 = vmatprep.mubr.msk.f32.mxu0 %vm1644_vm0, %v1645_v21 }
 0x620   :  { %1479 = vmatprep.subr.bf16.mxu0 %v1643_v6 }
 0x623   :  { %1481 = vmatpush3.bf16.msra.mxu0 %v1686_v18 }
 0x624   :  { %1488 = vmatprep.subr.bf16.mxu0 %v1643_v6 }
 0x6f1   :  { %v418_v8 = vpop.f32.mrb[2].mxu0 }
 0x6f2   :  { %v423_v9 = vrot.slane %v418_v8, 4  ;;  %v1358_v10 = vpop.f32.mrb[3].mxu0 }
 0x6f4   :  { %v425_v11 = vadd.f32 %v423_v9, %v1711_v35 }
 0x6f6   :  { %1543 = vtanh.f32 %v425_v11  ;;  %v1228_v13 = vmul.f32 -1.442695, %v425_v11 }
 0x6f8   :  { %1545 = vpow2.f32 %v1228_v13 }
 0x700   :  { %v1544_v12 = vpop.eup %1543 }
 0x701   :  { %438 = vrot.lane.b32.xlu0 %v1544_v12, %s1646_s0 }
 0x702   :  { %v1546_v15 = vpop.eup %1545 }
 0x703   :  { %v429_v16 = vadd.f32 1.0, %v1546_v15 }
 0x705   :  { %1547 = vrcp.f32 %v429_v16 }
 0x70f   :  { %v1548_v17 = vpop.eup %1547 }
 0x710   :  { %v436_v23 = vmul.f32 %v1548_v17, %v434_v22 }
 0x773   :  { %v439_v19 = vpop.permute.xlu0 %438 }
 0x774   :  { %v441_v20 = vmul.f32 %v1548_v17, %v439_v19 }
 0x776   :  { %443 = vrot.lane.b32.xlu1 %v441_v20, %s1647_s1 }
 0x7e8   :  { %v444_v24 = vpop.permute.xlu1 %443 }
 0x7e9   :  { %v446_v25 = vadd.f32 %v444_v24, %v436_v23 }
 0x7eb   :  { %1549 = vtanh.f32 %v446_v25  ;;  %v541_v46 = vrot.slane %v446_v25, 6 }
 0x7f5   :  { %v1550_v26 = vpop.eup %1549 }
 0x7f6   :  { %449 = vrot.lane.b32.xlu0 %v1550_v26, %s1646_s0 }
 0x868   :  { %v450_v27 = vpop.permute.xlu0 %449 }
 0x869   :  { %v452_v28 = vmul.f32 %v1548_v17, %v450_v27 }
 0x86b   :  { %v454_v30 = vrot.slane %v452_v28, 4  ;;  %v987_v31 = vsel %vm986_vm6, %v985_v29, %v452_v28 }
 0x86d   :  { %455 = vrot.lane.b32.xlu1 %v454_v30, %s1647_s1 }
 0x8df   :  { %v456_v32 = vpop.permute.xlu1 %455 }
 0x8e0   :  { %1368 = vmatmul.mubr.msk.f32.vlgmr.msra.gmra.mrb[4].mxu1 %vm141_vm4, %v456_v32 }
 0x8e1   :  { %1484 = vmatpush3.bf16.msra.mxu1 %v1683_v14  ;;  %1389 = vmatprep.mubr.msk.f32.mxu1 %vm1644_vm0, %v1645_v21 }
 0x8e2   :  { %1485 = vmatprep.subr.bf16.mxu1 %v1643_v6 }
 0x8e5   :  { %1487 = vmatpush3.bf16.msra.mxu1 %v1686_v18 }
 0x8e6   :  { %1494 = vmatprep.subr.bf16.mxu1 %v1643_v6 }
 0x9b3   :  { %v525_v34 = vpop.f32.mrb[4].mxu1 }
 0x9b4   :  { %v530_v36 = vrot.slane %v525_v34, 2  ;;  %v1369_v37 = vpop.f32.mrb[5].mxu1 }
 0x9b6   :  { %v532_v38 = vadd.f32 %v530_v36, %v1711_v35 }
 0x9b8   :  { %1551 = vtanh.f32 %v532_v38  ;;  %v1230_v40 = vmul.f32 -1.442695, %v532_v38 }
 0x9ba   :  { %1553 = vpow2.f32 %v1230_v40 }
 0x9c2   :  { %v1552_v39 = vpop.eup %1551 }
 0x9c3   :  { %545 = vrot.lane.b32.xlu0 %v1552_v39, %s1646_s0 }
 0x9c4   :  { %v1554_v41 = vpop.eup %1553 }
 0x9c5   :  { %v536_v42 = vadd.f32 1.0, %v1554_v41 }
 0x9c7   :  { %1555 = vrcp.f32 %v536_v42 }
 0x9d1   :  { %v1556_v43 = vpop.eup %1555 }
 0x9d2   :  { %v543_v47 = vmul.f32 %v1556_v43, %v541_v46 }
 0xa35   :  { %v546_v44 = vpop.permute.xlu0 %545 }
 0xa36   :  { %v548_v45 = vmul.f32 %v1556_v43, %v546_v44 }
 0xa38   :  { %550 = vrot.lane.b32.xlu1 %v548_v45, %s1647_s1 }
 0xaaa   :  { %v551_v48 = vpop.permute.xlu1 %550 }
 0xaab   :  { %v553_v49 = vadd.f32 %v551_v48, %v543_v47 }
 0xaad   :  { %1557 = vtanh.f32 %v553_v49  ;;  %v645_v1 = vrot.slane %v553_v49, 6 }
 0xab7   :  { %v1558_v35 = vpop.eup %1557 }
 0xab8   :  { %556 = vrot.lane.b32.xlu0 %v1558_v35, %s1646_s0 }
 0xb2a   :  { %v557_v50 = vpop.permute.xlu0 %556 }
 0xb2b   :  { %v559_v51 = vmul.f32 %v1556_v43, %v557_v50 }
 0xb2d   :  { %v561_v52 = vrot.slane %v559_v51, 6  ;;  %v1760_v53 = vsel %vm988_vm7, %v987_v31, %v559_v51 }
 0xb2f   :  { %562 = vrot.lane.b32.xlu1 %v561_v52, %s1647_s1 }
 0xba1   :  { %v563_v54 = vpop.permute.xlu1 %562 }
 0xba2   :  { %1379 = vmatmul.mubr.msk.f32.vlgmr.msra.gmra.mrb[4].mxu0 %vm141_vm4, %v563_v54 }
 0xba3   :  { %1490 = vmatpush3.bf16.msra.mxu0 %v1683_v14  ;;  %1400 = vmatprep.mubr.msk.f32.mxu0 %vm1644_vm0, %v1645_v21 }
 0xba4   :  { %1491 = vmatprep.subr.bf16.mxu0 %v1643_v6 }
 0xba7   :  { %1493 = vmatpush3.bf16.msra.mxu0 %v1686_v18 }
 0xc75   :  { %v632_v55 = vpop.f32.mrb[4].mxu0 }
 0xc76   :  { %v636_v56 = vadd.f32 %v632_v55, %v1709_v33  ;;  %v1380_v57 = vpop.f32.mrb[5].mxu0 }
 0xc78   :  { %1559 = vtanh.f32 %v636_v56  ;;  %v1232_v59 = vmul.f32 -1.442695, %v636_v56 }
 0xc7a   :  { %1561 = vpow2.f32 %v1232_v59 }
 0xc82   :  { %v1560_v58 = vpop.eup %1559 }
 0xc83   :  { %649 = vrot.lane.b32.xlu0 %v1560_v58, %s1646_s0 }
 0xc84   :  { %v1562_v60 = vpop.eup %1561 }
 0xc85   :  { %v640_v61 = vadd.f32 1.0, %v1562_v60 }
 0xc87   :  { %1563 = vrcp.f32 %v640_v61 }
 0xc91   :  { %v1564_v62 = vpop.eup %1563 }
 0xc92   :  { %v647_v2 = vmul.f32 %v1564_v62, %v645_v1 }
 0xcf5   :  { %v650_v63 = vpop.permute.xlu0 %649 }
 0xcf6   :  { %v652_v0 = vmul.f32 %v1564_v62, %v650_v63 }
 0xcf8   :  { %654 = vrot.lane.b32.xlu1 %v652_v0, %s1647_s1 }
 0xd6a   :  { %v655_v3 = vpop.permute.xlu1 %654 }
 0xd6b   :  { %v657_v4 = vadd.f32 %v655_v3, %v647_v2 }
 0xd6d   :  { %1565 = vtanh.f32 %v657_v4 }
 0xd77   :  { %v1566_v5 = vpop.eup %1565 }
 0xd78   :  { %660 = vrot.lane.b32.xlu0 %v1566_v5, %s1646_s0  ;;  %v994_v5 = vld [vmem:[#allocation2 + $0x70] sm:$0xff] }
 0xdea   :  { %v661_v7 = vpop.permute.xlu0 %660 }
 0xdeb   :  { %v1773_v8 = vmul.f32 %v1564_v62, %v661_v7  ;;  %v995_v7 = vld [vmem:[#allocation2 + $0x78] sm:$0xff] }
 0xded   :  { %665 = vrot.lane.b32.xlu1 %v1773_v8, %s1647_s1 }
 0xe5f   :  { %v666_v9 = vpop.permute.xlu1 %665 }
 0xe60   :  { %1390 = vmatmul.mubr.msk.f32.vlgmr.msra.gmra.mrb[6].mxu1 %vm141_vm4, %v666_v9  ;;  %v996_v9 = vld [vmem:[#allocation2 + $0x80] sm:$0xff] }
 0xe61   :  { %1496 = vmatpush3.bf16.msra.mxu1 %v1683_v14  ;;  %1411 = vmatprep.mubr.msk.f32.mxu1 %vm1644_vm0, %v1645_v21 }
 0xe62   :  { %1497 = vmatprep.subr.bf16.mxu1 %v1643_v6  ;;  %v751_v6 = vrot.slane %v657_v4, 6  ;;  %v993_v4 = vld [vmem:[#allocation2 + $0x68] sm:$0xff] }
 0xe65   :  { %1499 = vmatpush3.bf16.msra.mxu1 %v1686_v18 }
 0xf33   :  { %v735_v10 = vpop.f32.mrb[6].mxu1 }
 0xf34   :  { %v740_v11 = vrot.slane %v735_v10, 6  ;;  %v1391_v12 = vpop.f32.mrb[7].mxu1  ;;  %v1504_v10 = vpack.c.bf16 %v996_v9, %v995_v7 }
 0xf35   :  { %v1090_v12 = vld [vmem:[#allocation2 + $0x98] sm:$0xff] }
 0xf36   :  { %v742_v13 = vadd.f32 %v740_v11, %v1709_v33 }
 0xf38   :  { %1567 = vtanh.f32 %v742_v13  ;;  %v1234_v16 = vmul.f32 -1.442695, %v742_v13 }
 0xf3a   :  { %1569 = vpow2.f32 %v1234_v16 }
 0xf42   :  { %v1568_v15 = vpop.eup %1567 }
 0xf43   :  { %755 = vrot.lane.b32.xlu0 %v1568_v15, %s1646_s0 }
 0xf44   :  { %v1570_v17 = vpop.eup %1569 }
 0xf45   :  { %v746_v14 = vadd.f32 1.0, %v1570_v17 }
 0xf47   :  { %1571 = vrcp.f32 %v746_v14 }
 0xf51   :  { %v1572_v19 = vpop.eup %1571 }
 0xf52   :  { %v753_v18 = vmul.f32 %v1572_v19, %v751_v6  ;;  %v1239_v6 = vld [vmem:[#allocation2 + $0x88] ss:$0 sm:$0xff] }
 0xfb5   :  { %v756_v21 = vpop.permute.xlu0 %755 }
 0xfb6   :  { %v758_v20 = vmul.f32 %v1572_v19, %v756_v21  ;;  %v1092_v21 = vld [vmem:[#allocation2 + $0xa8] sm:$0xff] }
 0xfb8   :  { %760 = vrot.lane.b32.xlu1 %v758_v20, %s1647_s1 }
0x102a   :  { %v761_v22 = vpop.permute.xlu1 %760 }
0x102b   :  { %v763_v23 = vadd.f32 %v761_v22, %v753_v18 }
0x102d   :  { %1573 = vtanh.f32 %v763_v23  ;;  %v858_v42 = vrot.slane %v763_v23, 6 }
0x1037   :  { %v1574_v24 = vpop.eup %1573 }
0x1038   :  { %766 = vrot.lane.b32.xlu0 %v1574_v24, %s1646_s0 }
0x10aa   :  { %v767_v25 = vpop.permute.xlu0 %766 }
0x10ab   :  { %v769_v26 = vmul.f32 %v1572_v19, %v767_v25  ;;  %v1091_v19 = vld [vmem:[#allocation2 + $0xa0] sm:$0xff] }
0x10ac   :  { %v1512_v20 = vpack.c.bf16 %v1092_v21, %v1091_v19 }
0x10ad   :  { %v771_v27 = vrot.slane %v769_v26, 2  ;;  %v990_v49 = vsel %vm984_vm5, %v1773_v8, %v769_v26  ;;  %v1500_v8 = vpack.c.bf16 %v994_v5, %v993_v4 }
0x10af   :  { %772 = vrot.lane.b32.xlu1 %v771_v27, %s1647_s1  ;;  %1501 = vmatprep.subr.bf16.mxu0 %v1500_v8  ;;  %v1242_v27 = vld [vmem:[#allocation2 + $0xb0] ss:$0 sm:$0xff] }
0x1121   :  { %v773_v28 = vpop.permute.xlu1 %772 }
0x1122   :  { %1401 = vmatmul.mubr.msk.f32.vlgmr.msra.gmra.mrb[6].mxu0 %vm141_vm4, %v773_v28 }
0x1123   :  { %1503 = vmatpush3.bf16.msra.mxu0 %v1500_v8 }
0x1124   :  { %1505 = vmatprep.subr.bf16.mxu0 %v1504_v10 }
0x1127   :  { %1507 = vmatpush3.bf16.msra.mxu0 %v1504_v10 }
0x11f5   :  { %v842_v29 = vpop.f32.mrb[6].mxu0 }
0x11f6   :  { %v847_v30 = vrot.slane %v842_v29, 4  ;;  %v1402_v31 = vpop.f32.mrb[7].mxu0 }
0x11f8   :  { %v849_v32 = vadd.f32 %v847_v30, %v1709_v33 }
0x11fa   :  { %1575 = vtanh.f32 %v849_v32  ;;  %v1236_v36 = vmul.f32 -1.442695, %v849_v32 }
0x11fc   :  { %1577 = vpow2.f32 %v1236_v36 }
0x1204   :  { %v1576_v34 = vpop.eup %1575 }
0x1205   :  { %862 = vrot.lane.b32.xlu0 %v1576_v34, %s1646_s0 }
0x1206   :  { %v1578_v37 = vpop.eup %1577 }
0x1207   :  { %v853_v38 = vadd.f32 1.0, %v1578_v37 }
0x1209   :  { %1579 = vrcp.f32 %v853_v38 }
0x1213   :  { %v1580_v39 = vpop.eup %1579 }
0x1214   :  { %v860_v43 = vmul.f32 %v1580_v39, %v858_v42 }
0x1277   :  { %v863_v40 = vpop.permute.xlu0 %862 }
0x1278   :  { %v865_v41 = vmul.f32 %v1580_v39, %v863_v40 }
0x127a   :  { %867 = vrot.lane.b32.xlu1 %v865_v41, %s1647_s1 }
0x12ec   :  { %v868_v44 = vpop.permute.xlu1 %867 }
0x12ed   :  { %v870_v45 = vadd.f32 %v868_v44, %v860_v43 }
0x12ef   :  { %1581 = vtanh.f32 %v870_v45  ;;  %v965_v0 = vrot.slane %v870_v45, 6 }
0x12f9   :  { %v1582_v46 = vpop.eup %1581 }
0x12fa   :  { %873 = vrot.lane.b32.xlu0 %v1582_v46, %s1646_s0 }
0x136c   :  { %v874_v47 = vpop.permute.xlu0 %873 }
0x136d   :  { %v876_v48 = vmul.f32 %v1580_v39, %v874_v47 }
0x136f   :  { %v878_v35 = vrot.slane %v876_v48, 4  ;;  %v991_v50 = vsel %vm986_vm6, %v990_v49, %v876_v48 }
0x1371   :  { %879 = vrot.lane.b32.xlu1 %v878_v35, %s1647_s1 }
0x13e3   :  { %v880_v51 = vpop.permute.xlu1 %879 }
0x13e4   :  { %1412 = vmatmul.mubr.msk.f32.vlgmr.msra.gmra.mrb[8].mxu1 %vm141_vm4, %v880_v51 }
0x14b7   :  { %v949_v52 = vpop.f32.mrb[8].mxu1 }
0x14b8   :  { %v954_v54 = vrot.slane %v949_v52, 2  ;;  %v1413_v55 = vpop.f32.mrb[9].mxu1 }
0x14ba   :  { %v956_v56 = vadd.f32 %v954_v54, %v1709_v33 }
0x14bc   :  { %1583 = vtanh.f32 %v956_v56  ;;  %v1238_v58 = vmul.f32 -1.442695, %v956_v56 }
0x14be   :  { %1585 = vpow2.f32 %v1238_v58 }
0x14c6   :  { %v1584_v57 = vpop.eup %1583 }
0x14c7   :  { %969 = vrot.lane.b32.xlu0 %v1584_v57, %s1646_s0 }
0x14c8   :  { %v1586_v59 = vpop.eup %1585 }
0x14c9   :  { %v960_v60 = vadd.f32 1.0, %v1586_v59 }
0x14cb   :  { %1587 = vrcp.f32 %v960_v60 }
0x14d5   :  { %v1588_v61 = vpop.eup %1587 }
0x14d6   :  { %v967_v1 = vmul.f32 %v1588_v61, %v965_v0 }
0x1539   :  { %v970_v62 = vpop.permute.xlu0 %969 }
0x153a   :  { %v972_v63 = vmul.f32 %v1588_v61, %v970_v62 }
0x153c   :  { %974 = vrot.lane.b32.xlu1 %v972_v63, %s1647_s1 }
0x1540   :  { %1004 = vrot.lane.b32.xlu1 %v1760_v53, %s1647_s1  ;;  %v1089_v53 = vld [vmem:[#allocation2 + $0x90] sm:$0xff] }
0x1541   :  { %v1508_v13 = vpack.c.bf16 %v1090_v12, %v1089_v53 }
0x1543   :  { %1509 = vmatprep.subr.bf16.mxu1 %v1508_v13 }
0x1544   :  { %1511 = vmatpush3.bf16.msra.mxu1 %v1508_v13 }
0x1545   :  { %1513 = vmatprep.subr.bf16.mxu1 %v1512_v20 }
0x1548   :  { %1515 = vmatpush3.bf16.msra.mxu1 %v1512_v20 }
0x15ae   :  { %v975_v33 = vpop.permute.xlu1 %974 }
0x15af   :  { %v977_v2 = vadd.f32 %v975_v33, %v967_v1 }
0x15b1   :  { %1589 = vtanh.f32 %v977_v2 }
0x15b2   :  { %v1005_v3 = vpop.permute.xlu1 %1004 }
0x15b3   :  { %1422 = vmatprep.mubr.msk.f32.mxu0 %vm141_vm4, %v1005_v3 }
0x15bb   :  { %v1590_v11 = vpop.eup %1589 }
0x15bc   :  { %980 = vrot.lane.b32.xlu0 %v1590_v11, %s1646_s0 }
0x162e   :  { %v981_v15 = vpop.permute.xlu0 %980 }
0x162f   :  { %v983_v16 = vmul.f32 %v1588_v61, %v981_v15 }
0x1631   :  { %v992_v17 = vsel %vm988_vm7, %v991_v50, %v983_v16 }
0x1632   :  { %1006 = vrot.lane.b32.xlu0 %v992_v17, %s1647_s1 }
0x16a4   :  { %v1007_v14 = vpop.permute.xlu0 %1006 }
0x16a5   :  { %1423 = vmatmul.mubr.msk.f32.vlgmr.msra.gmra.mrb[8].mxu0 %vm141_vm4, %v1007_v14 }
0x1778   :  { %v1424_v18 = vpop.f32.mrb[8].mxu0 }
0x1779   :  { %v1084_v22 = vadd.f32 %v1424_v18, %v1239_v6  ;;  %v1078_v23 = vpop.f32.mrb[9].mxu0 }
0x177a   :  { %v1079_v24 = vadd.f32 %v1239_v6, %v1078_v23 }
0x177b   :  { %v1088_v26 = vmax.f32 %v1084_v22, 0.0 }
0x177c   :  { %v1087_v25 = vmax.f32 %v1079_v24, 0.0 }
0x177e   :  { %1433 = vmatprep.mubr.msk.f32.mxu1 %vm141_vm4, %v1087_v25 }
0x177f   :  { %1434 = vmatmul.mubr.msk.f32.vlgmr.msra.gmra.mrb[10].mxu1 %vm141_vm4, %v1088_v26 }
0x1852   :  { %v1435_v28 = vpop.f32.mrb[10].mxu1 }
0x1853   :  { %v1170_v29 = vpop.f32.mrb[11].mxu1  ;;  %v1176_v32 = vadd.f32 %v1435_v28, %v1242_v27 }
0x1854   :  { %v1171_v30 = vadd.f32 %v1242_v27, %v1170_v29 }
0x1855   :  { %v1180_v38 = vmax.f32 %v1176_v32, 0.0 }
0x1856   :  { %v1179_v31 = vmax.f32 %v1171_v30, 0.0 }
0x1857   :  { %v1193_v42 = vrot.slane %v1180_v38, 2  ;;  %v1196_v44 = vrot.slane %v1180_v38, 4  ;;  %v1199_v47 = vrot.slane %v1180_v38, 6 }
0x1858   :  { %v1182_v34 = vrot.slane %v1179_v31, 2  ;;  %v1185_v37 = vrot.slane %v1179_v31, 4  ;;  %v1188_v40 = vrot.slane %v1179_v31, 6 }
0x185a   :  { %v1184_v36 = vadd.f32 %v1182_v34, %v1179_v31 }
0x185c   :  { %v1187_v39 = vadd.f32 %v1185_v37, %v1184_v36 }
0x185e   :  { %v1190_v41 = vadd.f32 %v1188_v40, %v1187_v39 }
0x1860   :  { %v1191_v43 = vadd.f32 %v1190_v41, %v1180_v38 }
0x1862   :  { %v1195_v45 = vadd.f32 %v1193_v42, %v1191_v43 }
0x1864   :  { %v1198_v46 = vadd.f32 %v1196_v44, %v1195_v45 }
0x1866   :  { %v1201_v48 = vadd.f32 %v1199_v47, %v1198_v46 }
0x1868   :  { %1203 = vst.msk [vmem:[#allocation5] sm:$0x3] %vm1202_vm8, %v1201_v48 }
0x1869   :  { %1624 = shalt.err (!%p1621_p12)
}
0x186a   :  { %s1625_s4 = scalar_lea.hbm %s1824_s2, 32 }
0x186b   :  { %p1626_p13 = scmp.ne.s32.totalorder %s1824_s2, %s1625_s4  ;;  %p1629_p0 = scmp.lt.u32.totalorder %s1625_s4, %s1824_s2 }
0x186d   :  { %p1631_p1 = pnand %p1629_p0, %p1626_p13 }
0x186f   :  { %1634 = shalt.err (!%p1631_p1)
}
0x1870   :  { %1213 = dma.vmem_to_hbm [thread:$0]  %s1211_s28, 32, %s1824_s2, [#allocation4]  }
0x1871   :  { %1637 = dma.done.wait [#allocation4], 32  }
0x1872   :  { %1638 = vsyncadd [#allocation4], 4294967264 }
0x1873   :  { %1217 = vsyncpa [#allocation3], 1 }
0x1874   :  { %1218 = vsyncpa [#allocation4], 1 }

</bundles_post_ra>
